<compile_context>
chip_gen: v7x
topology: tpu7x:2x2x1
jax: 0.10.0
libtpu: 0.0.40
codegen_flags: <defaults>
</compile_context>

<pallas_src>
import functools

import jax
import jax.numpy as jnp
from jax.experimental import pallas as pl
from jax.experimental.pallas import tpu as pltpu


def _self_attention_kernel(q_ref, k_ref, v_ref,
                           wq_ref, wk_ref, wv_ref,
                           bq_ref, bk_ref, bv_ref,
                           o_ref,
                           k_cache, v_cache,
                           *, head_nums, head_dim, kv_chunk, compute_dtype):
    """One grid step = (batch b [parallel], query tile qi [arbitrary]).

    Ref shapes (batch dim squeezed by BlockSpec):
      q_ref            : (tq, D_in)     compute_dtype
      k_ref / v_ref    : (S,  D_in)     compute_dtype   (full key/value sequence)
      wq/wk/wv refs    : (D_in, D_out)  compute_dtype   (whole-array VMEM, single copy)
      bq/bk/bv refs    : (1, D_out)     f32             (whole-array VMEM)
      o_ref            : (tq, D_out)
      k_cache/v_cache  : (S, D_out)     compute_dtype   persistent VMEM scratch
    """
    f32 = jnp.float32
    tq = q_ref.shape[0]
    seq = k_ref.shape[0]
    d_out = head_nums * head_dim
    nk = seq // kv_chunk
    exact = jnp.dtype(compute_dtype) == jnp.float32

    # ---- K/V projection: ONCE per batch (qi == 0), reused by all query tiles. ----
    # Projection is done in S-chunks so the f32 temporary is only (tk, D_out).
    @pl.when(pl.program_id(1) == 0)
    def _fill_kv_cache():
        for j in range(nk):
            rows = slice(j * kv_chunk, (j + 1) * kv_chunk)
            k_cache[rows, :] = (
                jnp.dot(k_ref[rows, :], wk_ref[...], preferred_element_type=f32)
                + bk_ref[...]).astype(compute_dtype)
            v_cache[rows, :] = (
                jnp.dot(v_ref[rows, :], wv_ref[...], preferred_element_type=f32)
                + bv_ref[...]).astype(compute_dtype)

    # ---- Q projection for this tile; fold 1/sqrt(head_dim) into Q (tq*D_out elems). ----
    scale = 1.0 / (head_dim ** 0.5)
    q_proj = (jnp.dot(q_ref[...], wq_ref[...], preferred_element_type=f32)
              + bq_ref[...]) * scale
    # TODO(synk): for head_dim not a multiple of 128 this reshape splits the lane dim
    # (XLU relayout); a lane-padded head layout would remove it.
    qh = q_proj.astype(compute_dtype).reshape(tq, head_nums, head_dim)

    # ---- Flash-style online softmax over KV chunks of the cached projections. ----
    m = jnp.full((head_nums, tq, 1), -jnp.inf, f32)
    l = jnp.zeros((head_nums, tq, 1), f32)
    acc = jnp.zeros((head_nums, tq, head_dim), f32)
    for j in range(nk):                       # nk is static (S // kv_chunk)
        rows = slice(j * kv_chunk, (j + 1) * kv_chunk)
        kh = k_cache[rows, :].reshape(kv_chunk, head_nums, head_dim)
        vh = v_cache[rows, :].reshape(kv_chunk, head_nums, head_dim)
        # All heads in one batched MXU contraction; K's last dim contracted directly.
        s = jnp.einsum("qhd,khd->hqk", qh, kh,
                       preferred_element_type=f32)            # (H, tq, tk) f32
        m_new = jnp.maximum(m, jnp.max(s, axis=-1, keepdims=True))
        alpha = jnp.exp(m - m_new)                             # (H, tq, 1)
        p = jnp.exp(s - m_new)                                 # (H, tq, tk)
        l = alpha * l + jnp.sum(p, axis=-1, keepdims=True)
        acc = alpha * acc + jnp.einsum("hqk,khd->hqd",
                                       p.astype(compute_dtype), vh,
                                       preferred_element_type=f32)  # (H, tq, Dh)
        m = m_new

    # ---- Normalize AFTER the PV matmul: (H, tq, Dh) elements, not (H, tq, S). ----
    if exact:
        inv_l = 1.0 / l                          # strict parity on the f32 path
    else:
        inv_l = pl.reciprocal(l, approx=True)    # EUP slot, bf16 path
    out = acc * inv_l                                           # (H, tq, Dh)
    out = jnp.swapaxes(out, 0, 1).reshape(tq, d_out)            # permute epilogue
    o_ref[...] = out.astype(o_ref.dtype)         # single lane-dense store


def _pick_vmem_limit():
    """~96 MiB on v5e/v6e (128 MiB VMEM), ~48 MiB on v7x (64 MiB VMEM)."""
    cap = 128 * 1024 * 1024
    try:
        cap = int(pltpu.get_tpu_info().vmem_capacity_bytes)
    except Exception:
        pass
    return max(32 * 1024 * 1024, min(cap - 16 * 1024 * 1024, 96 * 1024 * 1024))


def self_attention(query, key, value, params, *, head_nums, head_dim,
                   compute_dtype=jnp.bfloat16, q_block=128, kv_block=512):
    """query/key/value: (B, S, D_in). Returns (B, S, head_nums*head_dim) f32.

    Notes on tiling (per review):
      * q_block: 128 is safe everywhere; on v6e (256-wide MXU, 128 MiB VMEM) 256
        is preferred; on v7x re-derive the budget against 64 MiB before raising it.
      * kv_block bounds the (H, tq, tk) softmax intermediates independent of S.
      * Batch axis is the "parallel" axis; if B == 1 on v7x, a kv grid axis would
        be needed to keep both TensorCores busy (not implemented here).
    """
    B, S, D_in = query.shape
    D_out = head_nums * head_dim
    cdt = jnp.dtype(compute_dtype)

    tq = min(q_block, S)
    tk = min(kv_block, S)
    assert S % tq == 0, "seq_len must be divisible by the query tile"
    assert S % tk == 0, "seq_len must be divisible by the kv chunk"
    nq = S // tq

    cast = lambda a: a.astype(cdt)
    q_c, k_c, v_c = cast(query), cast(key), cast(value)
    wq, wk, wv = cast(params["wq"]), cast(params["wk"]), cast(params["wv"])
    bq = params["bq"].astype(jnp.float32).reshape(1, D_out)
    bk = params["bk"].astype(jnp.float32).reshape(1, D_out)
    bv = params["bv"].astype(jnp.float32).reshape(1, D_out)

    kernel = functools.partial(
        _self_attention_kernel,
        head_nums=head_nums, head_dim=head_dim, kv_chunk=tk, compute_dtype=cdt)

    # Grid-invariant weights/biases: whole-array resident in VMEM (one copy, no
    # pipeline double-buffering).
    vmem_whole = pl.BlockSpec(memory_space=pltpu.MemorySpace.VMEM)

    in_specs = [
        pl.BlockSpec((None, tq, D_in), lambda b, qi: (b, qi, 0)),   # q tile
        pl.BlockSpec((None, S, D_in), lambda b, qi: (b, 0, 0)),     # k (full seq, per batch)
        pl.BlockSpec((None, S, D_in), lambda b, qi: (b, 0, 0)),     # v (full seq, per batch)
        vmem_whole, vmem_whole, vmem_whole,                         # wq, wk, wv
        vmem_whole, vmem_whole, vmem_whole,                         # bq, bk, bv
    ]
    out_spec = pl.BlockSpec((None, tq, D_out), lambda b, qi: (b, qi, 0))
    out_shape = jax.ShapeDtypeStruct((B, S, D_out), jnp.float32)

    grid_spec = pltpu.PrefetchScalarGridSpec(
        num_scalar_prefetch=0,
        grid=(B, nq),                       # batch parallel, query-tile arbitrary
        in_specs=in_specs,
        out_specs=out_spec,
        scratch_shapes=[
            pltpu.VMEM((S, D_out), cdt),    # K projection cache (per batch)
            pltpu.VMEM((S, D_out), cdt),    # V projection cache (per batch)
        ])

    args = (q_c, k_c, v_c, wq, wk, wv, bq, bk, bv)
    bytes_in = sum(int(a.size) * a.dtype.itemsize for a in args)
    cost = pl.CostEstimate(
        flops=int(2 * B * S * D_in * 3 * D_out + 4 * B * S * S * D_out),
        transcendentals=int(B * head_nums * S * S),
        bytes_accessed=int(bytes_in + B * S * D_out * 4))

    return pl.pallas_call(
        kernel,
        out_shape=out_shape,
        grid_spec=grid_spec,
        compiler_params=pltpu.CompilerParams(
            dimension_semantics=("parallel", "arbitrary"),
            vmem_limit_bytes=_pick_vmem_limit()),
        cost_estimate=cost,
    )(*args)


def reference_self_attention(query, key, value, params, *, head_nums, head_dim):
    """Pure-JAX f32 reference mirroring the PyTorch forward."""
    B, S, _ = query.shape
    q = query @ params["wq"] + params["bq"]
    k = key @ params["wk"] + params["bk"]
    v = value @ params["wv"] + params["bv"]

    def split(x):
        return x.reshape(B, S, head_nums, head_dim).transpose(0, 2, 1, 3)

    qh, kh, vh = split(q), split(k), split(v)
    scores = jnp.einsum("bhqd,bhkd->bhqk", qh, kh) / (head_dim ** 0.5)
    w = jax.nn.softmax(scores, axis=-1)
    out = jnp.einsum("bhqk,bhkd->bhqd", w, vh)
    return out.transpose(0, 2, 1, 3).reshape(B, S, head_nums * head_dim)


if __name__ == "__main__":
    # Small shapes consistent with the module.
    B, S, D_in = 2, 8, 32
    head_nums, head_dim = 2, 16
    D_out = head_nums * head_dim

    key0 = jax.random.PRNGKey(0)
    ks = jax.random.split(key0, 9)

    # nn.Linear-style init (uniform, bound 1/sqrt(fan_in)), weights pre-transposed.
    bound = 1.0 / (D_in ** 0.5)
    params = {
        "wq": jax.random.uniform(ks[0], (D_in, D_out), jnp.float32, -bound, bound),
        "bq": jax.random.uniform(ks[1], (1, D_out), jnp.float32, -bound, bound),
        "wk": jax.random.uniform(ks[2], (D_in, D_out), jnp.float32, -bound, bound),
        "bk": jax.random.uniform(ks[3], (1, D_out), jnp.float32, -bound, bound),
        "wv": jax.random.uniform(ks[4], (D_in, D_out), jnp.float32, -bound, bound),
        "bv": jax.random.uniform(ks[5], (1, D_out), jnp.float32, -bound, bound),
    }

    query = jax.random.normal(ks[6], (B, S, D_in), jnp.float32)
    key_in = jax.random.normal(ks[7], (B, S, D_in), jnp.float32)
    value = jax.random.normal(ks[8], (B, S, D_in), jnp.float32)

    ref = reference_self_attention(query, key_in, value, params,
                                   head_nums=head_nums, head_dim=head_dim)

    # 1) f32 compute path (exact softmax divide): tight parity with the reference.
    out_f32 = jax.block_until_ready(self_attention(
        query, key_in, value, params, head_nums=head_nums, head_dim=head_dim,
        compute_dtype=jnp.float32))
    assert out_f32.shape == (B, S, D_out)
    assert jnp.allclose(out_f32, ref, atol=2e-3, rtol=2e-2), \
        f"f32 max abs err {jnp.max(jnp.abs(out_f32 - ref))}"

    # 2) Default bf16 MXU path (f32 accumulation + f32 softmax), looser tolerance.
    out_bf = jax.block_until_ready(self_attention(
        query, key_in, value, params, head_nums=head_nums, head_dim=head_dim))
    assert jnp.allclose(out_bf, ref, atol=5e-2, rtol=5e-2), \
        f"bf16 max abs err {jnp.max(jnp.abs(out_bf - ref))}"

    # 3) True self-attention (q = k = v) goes through the same kernel.
    out_self = jax.block_until_ready(self_attention(
        query, query, query, params, head_nums=head_nums, head_dim=head_dim,
        compute_dtype=jnp.float32))
    ref_self = reference_self_attention(query, query, query, params,
                                        head_nums=head_nums, head_dim=head_dim)
    assert jnp.allclose(out_self, ref_self, atol=2e-3, rtol=2e-2), \
        f"self f32 max abs err {jnp.max(jnp.abs(out_self - ref_self))}"

    print("KERNEL_OK")
</pallas_src>

<mosaic_0001>
module attributes {stable_mosaic.version = 11 : i64} {
  func.func @_self_attention_kernel(%arg0: i32, %arg1: i32, %arg2: memref<1x8x32xf32, #tpu.memory_space<vmem>>, %arg3: memref<1x8x32xf32, #tpu.memory_space<vmem>>, %arg4: memref<1x8x32xf32, #tpu.memory_space<vmem>>, %arg5: memref<32x32xf32, #tpu.memory_space<vmem>>, %arg6: memref<32x32xf32, #tpu.memory_space<vmem>>, %arg7: memref<32x32xf32, #tpu.memory_space<vmem>>, %arg8: memref<1x32xf32, #tpu.memory_space<vmem>>, %arg9: memref<1x32xf32, #tpu.memory_space<vmem>>, %arg10: memref<1x32xf32, #tpu.memory_space<vmem>>, %arg11: memref<1x8x32xf32, #tpu.memory_space<vmem>>, %arg12: memref<8x32xf32, #tpu.memory_space<vmem>>, %arg13: memref<8x32xf32, #tpu.memory_space<vmem>>) attributes {dimension_semantics = [#tpu.dimension_semantics<parallel>, #tpu.dimension_semantics<arbitrary>], iteration_bounds = array<i64: 2, 1>, scalar_prefetch = 0 : i64, scratch_operands = 2 : i64, tpu.core_type = #tpu.core_type<tc>, window_params = [{transform_indices = @transform_0, window_bounds = array<i64: 1, 8, 32>}, {transform_indices = @transform_1, window_bounds = array<i64: 1, 8, 32>}, {transform_indices = @transform_2, window_bounds = array<i64: 1, 8, 32>}, {pipeline_mode = #tpu.pipeline_mode<synchronous>, transform_indices = @transform_3, window_bounds = array<i64: 32, 32>}, {pipeline_mode = #tpu.pipeline_mode<synchronous>, transform_indices = @transform_4, window_bounds = array<i64: 32, 32>}, {pipeline_mode = #tpu.pipeline_mode<synchronous>, transform_indices = @transform_5, window_bounds = array<i64: 32, 32>}, {pipeline_mode = #tpu.pipeline_mode<synchronous>, transform_indices = @transform_6, window_bounds = array<i64: 1, 32>}, {pipeline_mode = #tpu.pipeline_mode<synchronous>, transform_indices = @transform_7, window_bounds = array<i64: 1, 32>}, {pipeline_mode = #tpu.pipeline_mode<synchronous>, transform_indices = @transform_8, window_bounds = array<i64: 1, 32>}, {transform_indices = @transform_9, window_bounds = array<i64: 1, 8, 32>}]} {
    %c0_i32 = arith.constant 0 : i32
    %0 = arith.cmpi eq, %arg1, %c0_i32 : i32
    %1 = arith.extui %0 : i1 to i32
    %c0_i32_0 = arith.constant 0 : i32
    %2 = arith.cmpi ne, %1, %c0_i32_0 : i32
    scf.if %2 {
      %c0_23 = arith.constant 0 : index
      %c0_24 = arith.constant 0 : index
      %c0_25 = arith.constant 0 : index
      %46 = vector.load %arg3[%c0_23, %c0_24, %c0_25] : memref<1x8x32xf32, #tpu.memory_space<vmem>>, vector<1x8x32xf32>
      %47 = vector.shape_cast %46 : vector<1x8x32xf32> to vector<8x32xf32>
      %c0_26 = arith.constant 0 : index
      %c0_27 = arith.constant 0 : index
      %48 = vector.load %arg6[%c0_26, %c0_27] : memref<32x32xf32, #tpu.memory_space<vmem>>, vector<32x32xf32>
      %cst_28 = arith.constant dense<0.000000e+00> : vector<8x32xf32>
      %49 = tpu.matmul %47, %48, %cst_28 {dimension_numbers = #tpu.dot_dimension_numbers<[1], [0], [0], [1], [0, 0, 1, 1], [], []>} : vector<8x32xf32>, vector<32x32xf32>, vector<8x32xf32> -> vector<8x32xf32>
      %c0_29 = arith.constant 0 : index
      %c0_30 = arith.constant 0 : index
      %50 = vector.load %arg9[%c0_29, %c0_30] : memref<1x32xf32, #tpu.memory_space<vmem>>, vector<1x32xf32>
      %51 = vector.broadcast %50 : vector<1x32xf32> to vector<8x32xf32>
      %52 = arith.addf %49, %51 : vector<8x32xf32>
      %c0_31 = arith.constant 0 : index
      %c0_32 = arith.constant 0 : index
      %53 = vector.load %arg12[%c0_31, %c0_32] : memref<8x32xf32, #tpu.memory_space<vmem>>, vector<8x32xf32>
      tpu.vector_store %arg12[%c0_31, %c0_32], %52 {strides = array<i32>} : memref<8x32xf32, #tpu.memory_space<vmem>>, vector<8x32xf32>,
      %c0_33 = arith.constant 0 : index
      %c0_34 = arith.constant 0 : index
      %c0_35 = arith.constant 0 : index
      %54 = vector.load %arg4[%c0_33, %c0_34, %c0_35] : memref<1x8x32xf32, #tpu.memory_space<vmem>>, vector<1x8x32xf32>
      %55 = vector.shape_cast %54 : vector<1x8x32xf32> to vector<8x32xf32>
      %c0_36 = arith.constant 0 : index
      %c0_37 = arith.constant 0 : index
      %56 = vector.load %arg7[%c0_36, %c0_37] : memref<32x32xf32, #tpu.memory_space<vmem>>, vector<32x32xf32>
      %cst_38 = arith.constant dense<0.000000e+00> : vector<8x32xf32>
      %57 = tpu.matmul %55, %56, %cst_38 {dimension_numbers = #tpu.dot_dimension_numbers<[1], [0], [0], [1], [0, 0, 1, 1], [], []>} : vector<8x32xf32>, vector<32x32xf32>, vector<8x32xf32> -> vector<8x32xf32>
      %c0_39 = arith.constant 0 : index
      %c0_40 = arith.constant 0 : index
      %58 = vector.load %arg10[%c0_39, %c0_40] : memref<1x32xf32, #tpu.memory_space<vmem>>, vector<1x32xf32>
      %59 = vector.broadcast %58 : vector<1x32xf32> to vector<8x32xf32>
      %60 = arith.addf %57, %59 : vector<8x32xf32>
      %c0_41 = arith.constant 0 : index
      %c0_42 = arith.constant 0 : index
      %61 = vector.load %arg13[%c0_41, %c0_42] : memref<8x32xf32, #tpu.memory_space<vmem>>, vector<8x32xf32>
      tpu.vector_store %arg13[%c0_41, %c0_42], %60 {strides = array<i32>} : memref<8x32xf32, #tpu.memory_space<vmem>>, vector<8x32xf32>,
    } else {
    }
    %c0 = arith.constant 0 : index
    %c0_1 = arith.constant 0 : index
    %c0_2 = arith.constant 0 : index
    %3 = vector.load %arg2[%c0, %c0_1, %c0_2] : memref<1x8x32xf32, #tpu.memory_space<vmem>>, vector<1x8x32xf32>
    %4 = vector.shape_cast %3 : vector<1x8x32xf32> to vector<8x32xf32>
    %c0_3 = arith.constant 0 : index
    %c0_4 = arith.constant 0 : index
    %5 = vector.load %arg5[%c0_3, %c0_4] : memref<32x32xf32, #tpu.memory_space<vmem>>, vector<32x32xf32>
    %cst = arith.constant dense<0.000000e+00> : vector<8x32xf32>
    %6 = tpu.matmul %4, %5, %cst {dimension_numbers = #tpu.dot_dimension_numbers<[1], [0], [0], [1], [0, 0, 1, 1], [], []>} : vector<8x32xf32>, vector<32x32xf32>, vector<8x32xf32> -> vector<8x32xf32>
    %c0_5 = arith.constant 0 : index
    %c0_6 = arith.constant 0 : index
    %7 = vector.load %arg8[%c0_5, %c0_6] : memref<1x32xf32, #tpu.memory_space<vmem>>, vector<1x32xf32>
    %8 = vector.broadcast %7 : vector<1x32xf32> to vector<8x32xf32>
    %9 = arith.addf %6, %8 : vector<8x32xf32>
    %cst_7 = arith.constant 2.500000e-01 : f32
    %10 = vector.broadcast %cst_7 : f32 to vector<8x32xf32>
    %11 = arith.mulf %9, %10 : vector<8x32xf32>
    %12 = vector.shape_cast %11 : vector<8x32xf32> to vector<8x2x16xf32>
    %cst_8 = arith.constant 0xFF800000 : f32
    %13 = vector.broadcast %cst_8 : f32 to vector<2x8x1xf32>
    %cst_9 = arith.constant 0.000000e+00 : f32
    %14 = vector.broadcast %cst_9 : f32 to vector<2x8x1xf32>
    %cst_10 = arith.constant 0.000000e+00 : f32
    %15 = vector.broadcast %cst_10 : f32 to vector<2x8x16xf32>
    %c0_11 = arith.constant 0 : index
    %c0_12 = arith.constant 0 : index
    %16 = vector.load %arg12[%c0_11, %c0_12] : memref<8x32xf32, #tpu.memory_space<vmem>>, vector<8x32xf32>
    %17 = vector.shape_cast %16 : vector<8x32xf32> to vector<8x2x16xf32>
    %c0_13 = arith.constant 0 : index
    %c0_14 = arith.constant 0 : index
    %18 = vector.load %arg13[%c0_13, %c0_14] : memref<8x32xf32, #tpu.memory_space<vmem>>, vector<8x32xf32>
    %19 = vector.shape_cast %18 : vector<8x32xf32> to vector<8x2x16xf32>
    "tpu.trace_start"() <{level = 10 : i32, message = "qhd,khd->hqk"}> : () -> ()
    %cst_15 = arith.constant dense<0.000000e+00> : vector<2x8x8xf32>
    %20 = tpu.matmul %12, %17, %cst_15 {dimension_numbers = #tpu.dot_dimension_numbers<[2], [2], [0], [0], [0, 1, 0, 0, 1, 0], [1], [1]>} : vector<8x2x16xf32>, vector<8x2x16xf32>, vector<2x8x8xf32> -> vector<2x8x8xf32>
    "tpu.trace_stop"() : () -> ()
    %cst_16 = arith.constant dense<0xFF800000> : vector<2x8xf32>
    %21 = vector.multi_reduction <maximumf>, %20, %cst_16 [2] : vector<2x8x8xf32> to vector<2x8xf32>
    %22 = vector.shape_cast %21 : vector<2x8xf32> to vector<2x8x1xf32>
    %23 = arith.maximumf %13, %22 : vector<2x8x1xf32>
    %24 = arith.subf %13, %23 : vector<2x8x1xf32>
    %25 = math.exp %24 : vector<2x8x1xf32>
    %26 = vector.broadcast %23 : vector<2x8x1xf32> to vector<2x8x8xf32>
    %27 = arith.subf %20, %26 : vector<2x8x8xf32>
    %28 = math.exp %27 : vector<2x8x8xf32>
    %29 = arith.mulf %25, %14 : vector<2x8x1xf32>
    %cst_17 = arith.constant dense<0.000000e+00> : vector<2x8xf32>
    %30 = vector.multi_reduction <add>, %28, %cst_17 [2] : vector<2x8x8xf32> to vector<2x8xf32>
    %31 = vector.shape_cast %30 : vector<2x8xf32> to vector<2x8x1xf32>
    %32 = arith.addf %29, %31 : vector<2x8x1xf32>
    %33 = vector.broadcast %25 : vector<2x8x1xf32> to vector<2x8x16xf32>
    %34 = arith.mulf %33, %15 : vector<2x8x16xf32>
    "tpu.trace_start"() <{level = 10 : i32, message = "hqk,khd->hqd"}> : () -> ()
    %cst_18 = arith.constant dense<0.000000e+00> : vector<2x8x16xf32>
    %35 = tpu.matmul %28, %19, %cst_18 {dimension_numbers = #tpu.dot_dimension_numbers<[2], [0], [1], [2], [0, 0, 0, 1, 1, 2], [0], [1]>} : vector<2x8x8xf32>, vector<8x2x16xf32>, vector<2x8x16xf32> -> vector<2x8x16xf32>
    "tpu.trace_stop"() : () -> ()
    %36 = arith.addf %34, %35 : vector<2x8x16xf32>
    %cst_19 = arith.constant 1.000000e+00 : f32
    %37 = vector.broadcast %cst_19 : f32 to vector<2x8x1xf32>
    %38 = arith.divf %37, %32 : vector<2x8x1xf32>
    %39 = vector.broadcast %38 : vector<2x8x1xf32> to vector<2x8x16xf32>
    %40 = arith.mulf %36, %39 : vector<2x8x16xf32>
    %41 = tpu.transpose %40, [1, 0, 2] : vector<2x8x16xf32> -> vector<8x2x16xf32>
    %42 = vector.shape_cast %41 : vector<8x2x16xf32> to vector<8x32xf32>
    %c0_20 = arith.constant 0 : index
    %c0_21 = arith.constant 0 : index
    %c0_22 = arith.constant 0 : index
    %43 = vector.load %arg11[%c0_20, %c0_21, %c0_22] : memref<1x8x32xf32, #tpu.memory_space<vmem>>, vector<1x8x32xf32>
    %44 = vector.shape_cast %43 : vector<1x8x32xf32> to vector<8x32xf32>
    %45 = vector.shape_cast %42 : vector<8x32xf32> to vector<1x8x32xf32>
    tpu.vector_store %arg11[%c0_20, %c0_21, %c0_22], %45 {strides = array<i32>} : memref<1x8x32xf32, #tpu.memory_space<vmem>>, vector<1x8x32xf32>,
    return
  }
  func.func @transform_0(%arg0: i32, %arg1: i32) -> (i32, i32, i32) {
    %c0_i32 = arith.constant 0 : i32
    %c0_i32_0 = arith.constant 0 : i32
    return %arg0, %arg1, %c0_i32 : i32, i32, i32
  }
  func.func @transform_1(%arg0: i32, %arg1: i32) -> (i32, i32, i32) {
    %c0_i32 = arith.constant 0 : i32
    %c0_i32_0 = arith.constant 0 : i32
    %c0_i32_1 = arith.constant 0 : i32
    return %arg0, %c0_i32, %c0_i32_0 : i32, i32, i32
  }
  func.func @transform_2(%arg0: i32, %arg1: i32) -> (i32, i32, i32) {
    %c0_i32 = arith.constant 0 : i32
    %c0_i32_0 = arith.constant 0 : i32
    %c0_i32_1 = arith.constant 0 : i32
    return %arg0, %c0_i32, %c0_i32_0 : i32, i32, i32
  }
  func.func @transform_3(%arg0: i32, %arg1: i32) -> (i32, i32) {
    %c0_i32 = arith.constant 0 : i32
    %c0_i32_0 = arith.constant 0 : i32
    %c0_i32_1 = arith.constant 0 : i32
    return %c0_i32, %c0_i32_0 : i32, i32
  }
  func.func @transform_4(%arg0: i32, %arg1: i32) -> (i32, i32) {
    %c0_i32 = arith.constant 0 : i32
    %c0_i32_0 = arith.constant 0 : i32
    %c0_i32_1 = arith.constant 0 : i32
    return %c0_i32, %c0_i32_0 : i32, i32
  }
  func.func @transform_5(%arg0: i32, %arg1: i32) -> (i32, i32) {
    %c0_i32 = arith.constant 0 : i32
    %c0_i32_0 = arith.constant 0 : i32
    %c0_i32_1 = arith.constant 0 : i32
    return %c0_i32, %c0_i32_0 : i32, i32
  }
  func.func @transform_6(%arg0: i32, %arg1: i32) -> (i32, i32) {
    %c0_i32 = arith.constant 0 : i32
    %c0_i32_0 = arith.constant 0 : i32
    %c0_i32_1 = arith.constant 0 : i32
    return %c0_i32, %c0_i32_0 : i32, i32
  }
  func.func @transform_7(%arg0: i32, %arg1: i32) -> (i32, i32) {
    %c0_i32 = arith.constant 0 : i32
    %c0_i32_0 = arith.constant 0 : i32
    %c0_i32_1 = arith.constant 0 : i32
    return %c0_i32, %c0_i32_0 : i32, i32
  }
  func.func @transform_8(%arg0: i32, %arg1: i32) -> (i32, i32) {
    %c0_i32 = arith.constant 0 : i32
    %c0_i32_0 = arith.constant 0 : i32
    %c0_i32_1 = arith.constant 0 : i32
    return %c0_i32, %c0_i32_0 : i32, i32
  }
  func.func @transform_9(%arg0: i32, %arg1: i32) -> (i32, i32, i32) {
    %c0_i32 = arith.constant 0 : i32
    %c0_i32_0 = arith.constant 0 : i32
    return %arg0, %arg1, %c0_i32 : i32, i32, i32
  }
}

</mosaic_0001>

<bundles_post_ra>
// kernel: tpu_custom_call.1
= control target key start
LH: loop header
LB: loop body
LE: loop exit
PB: predicated region body
PF: predicated region fallthrough
CT: control target
= control target key end

     0   :  { %s2706_s0 = inlined_call_operand.hbm [shape: f32[2,8,32], index: 0, kind: input, shape index: {}]   ;;  %s2707_s1 = inlined_call_operand.hbm [shape: f32[2,8,32], index: 1, kind: input, shape index: {}]   ;;  %s2708_s2 = inlined_call_operand.hbm [shape: f32[2,8,32], index: 2, kind: input, shape index: {}]   ;;  %s2709_s3 = inlined_call_operand.hbm [shape: f32[32,32], index: 3, kind: input, shape index: {}]   ;;  %s2710_s4 = inlined_call_operand.hbm [shape: f32[32,32], index: 4, kind: input, shape index: {}]   ;;  %s2711_s5 = inlined_call_operand.hbm [shape: f32[32,32], index: 5, kind: input, shape index: {}]   ;;  %s2712_s6 = inlined_call_operand.hbm [shape: f32[1,32], index: 6, kind: input, shape index: {}]   ;;  %s2713_s7 = inlined_call_operand.hbm [shape: f32[1,32], index: 7, kind: input, shape index: {}]   ;;  %s2714_s8 = inlined_call_operand.hbm [shape: f32[1,32], index: 8, kind: input, shape index: {}]   ;;  %s2715_s9 = inlined_call_operand.hbm [shape: f32[2,8,32], index: 9, kind: output, shape index: {}]  }
   0x1   :  { %2741 = sst [smem:[#allocation35_spill]] %s2707_s1 }
   0x2   :  { %2742 = sst [smem:[#allocation36_spill]] %s2709_s3 }
   0x3   :  { %2743 = sst [smem:[#allocation37_spill]] %s2711_s5 }
   0x4   :  { %2744 = sst [smem:[#allocation38_spill]] %s2713_s7 }
   0x5   :  { %2745 = sst [smem:[#allocation39_spill]] %s2715_s9 }
   0x6   :  { %14 = vsyncpa [#allocation5], 0 }
   0x7   :  { %16 = vsyncpa [#allocation5 + $0x1], 0 }
   0x8   :  { %17 = vsyncpa [#allocation8], 0 }
   0x9   :  { %19 = vsyncpa [#allocation8 + $0x1], 0 }
   0xa   :  { %20 = vsyncpa [#allocation11], 0 }
   0xb   :  { %21 = vsyncpa [#allocation14], 0 }
   0xc   :  { %22 = vsyncpa [#allocation17], 0 }
   0xd   :  { %23 = vsyncpa [#allocation6], 0 }
   0xe   :  { %25 = vsyncpa [#allocation6 + $0x1], 0  ;;  %s2233_s30 = smov 0   ;;  %s2235_s10 = smov 0  }
   0xf   :  { %s2237_s11 = smov 0   ;;  %s2239_s12 = smov 0  }
  0x10   :  { %s2241_s13 = smov 0   ;;  %s2243_s14 = smov 0  }
  0x11 LB: > { %2746 = sst [smem:[#allocation26_spill]] %s2142_s30  ;;  %s2264_s15 = sadd.s32 4294967295, %s2162_s14   ;;  %s2162_s14 = sphi %s2243_s14, %s31_s14   ;;  %s2158_s13 = sphi %s2241_s13, %s2797_s13   ;;  %s2154_s12 = sphi %s2239_s12, %s2796_s12   ;;  %s2150_s11 = sphi %s2237_s11, %s2800_s11   ;;  %s2146_s10 = sphi %s2235_s10, %s2799_s10   ;;  %s2142_s30 = sphi %s2233_s30, %s2798_s30  }
  0x12   : > { %2747 = sst [smem:[#allocation27_spill]] %s2154_s12  ;;  %p1505_p0 = scmp.ge.s32.totalorder %s2162_s14, 1 }
  0x13   : > { %2748 = sst [smem:[#allocation28_spill]] %s2158_s13  ;;  %p2718_p1 = scmp.eq.s32.totalorder %s2264_s15, 0 }
  0x14   : > { %2749 = sst [smem:[#allocation29_spill]] %s2162_s14  ;;  %p282_p2 = scmp.lt.s32.totalorder %s2162_s14, 3 }
  0x15   : > { %s2164_s17 = smov [#allocation10]   ;;  %s2165_s20 = smov [#allocation13]  }
  0x16   : > { %p2269_p3 = pnand %p1505_p0, %p282_p2  ;;  %s294_s18 = sshll.u32 %s2164_s17, 4  ;;  %s2273_s18 = int_to_ptr.vmem [resolvable:$true] %s294_s18 }
  0x17   : > { %s320_s21 = sshll.u32 %s2165_s20, 4  ;;  %s2166_s22 = smov [#allocation16]   ;;  %s2284_s21 = int_to_ptr.vmem [resolvable:$true] %s320_s21 }
  0x18   : > { %s2750_s16 = scalar_select %p2269_p3, 1, 0 }
  0x19   : > { %p1684_p4 = pneg %p2269_p3  ;;  %s2286_s23 = sshll.u32 %s2166_s22, 4  ;;  %s346_s23 = int_to_ptr.vmem [resolvable:$true] %s2286_s23 }
  0x1a   : > { %2751 = sst [smem:[#allocation30_spill]] %s2750_s16  ;;  %s2753_s3 = sld [smem:[#allocation36_spill]] }
  0x1b   : > { %p2280_p6 = pnand %p1684_p4, %p2718_p1 }
  0x1d   : > { %s2752_s19 = scalar_select %p2280_p6, 1, 0 }
  0x1e   : > { %p2296_p8 = pneg %p2280_p6 }
  0x20   : > { %s1806_s26 = scalar_lea.hbm %s2753_s3, 512 }
  0x21   : > { %p1807_p7 = scmp.ne.s32.totalorder %s2753_s3, %s1806_s26  ;;  %p1813_p11 = scmp.lt.u32.totalorder %s1806_s26, %s2753_s3 }
  0x22   : > { %s2754_s29 = scalar_select %p2296_p8, 1, 0 }
  0x23   : > { %p1809_p9 = pnand %p2296_p8, %p1807_p7 }
  0x25   : > { %p1810_p10 = pneg %p1809_p9 }
  0x27   : > { %p1815_p12 = pnand %p1813_p11, %p1810_p10 }
  0x29   : > { %1818 = shalt.err (!%p1815_p12)
}
  0x2a   : > { %s1819_s22 = scalar_lea.vmem %s2273_s18, 512  ;;  %p1827_p4 = scmp.lt.s32.totalorder %s2273_s18, %s2273_s18 }
  0x2b   : > { %p1820_p13 = scmp.ne.s32.totalorder %s2273_s18, %s1819_s22  ;;  %p1828_p5 = scmp.lt.s32.totalorder %s1819_s22, %s1819_s22 }
  0x2d   : > { %p1822_p0 = pnand %p1820_p13, %p2296_p8  ;;  %p1829_p7 = por %p1828_p5, %p1827_p4 }
  0x2f   : > { %p1823_p2 = pneg %p1822_p0 }
  0x31   : > { %p1830_p9 = pnand %p1829_p7, %p1823_p2 }
  0x33   : > { %1833 = shalt.err (!%p1830_p9)
}
  0x34   : > { %s2720_s24 = smov 128   ;;  %s2721_s25 = smov 8  }
  0x35   : > { %1687 = dma.hbm_to_vmem [thread:$0]  (!%p2280_p6), %s2753_s3, 512, %s2273_s18, [#allocation11], %s2720_s24, %s2720_s24, %s2721_s25  }
  0x36   : > { %s2755_s5 = sld [smem:[#allocation37_spill]] }
  0x3c   : > { %s1834_s20 = scalar_lea.hbm %s2755_s5, 512 }
  0x3d   : > { %p1835_p5 = scmp.ne.s32.totalorder %s2755_s5, %s1834_s20  ;;  %p1841_p12 = scmp.lt.u32.totalorder %s1834_s20, %s2755_s5 }
  0x3f   : > { %p1837_p10 = pnand %p1835_p5, %p2296_p8 }
  0x41   : > { %p1838_p11 = pneg %p1837_p10 }
  0x43   : > { %p1843_p13 = pnand %p1841_p12, %p1838_p11 }
  0x45   : > { %1846 = shalt.err (!%p1843_p13)
}
  0x46   : > { %s1847_s18 = scalar_lea.vmem %s2284_s21, 512  ;;  %p1855_p7 = scmp.lt.s32.totalorder %s2284_s21, %s2284_s21 }
  0x47   : > { %p1848_p0 = scmp.ne.s32.totalorder %s2284_s21, %s1847_s18  ;;  %p1856_p9 = scmp.lt.s32.totalorder %s1847_s18, %s1847_s18 }
  0x49   : > { %p1850_p2 = pnand %p1848_p0, %p2296_p8  ;;  %p1857_p5 = por %p1856_p9, %p1855_p7 }
  0x4b   : > { %p1851_p4 = pneg %p1850_p2 }
  0x4d   : > { %p1858_p10 = pnand %p1857_p5, %p1851_p4 }
  0x4f   : > { %1861 = shalt.err (!%p1858_p10)
}
  0x50   : > { %1693 = dma.hbm_to_vmem [thread:$0]  (!%p2280_p6), %s2755_s5, 512, %s2284_s21, [#allocation14], %s2720_s24, %s2720_s24, %s2721_s25  }
  0x51   : > { %s2756_s7 = sld [smem:[#allocation38_spill]] }
  0x57   : > { %s1862_s27 = scalar_lea.hbm %s2756_s7, 16 }
  0x58   : > { %p1863_p11 = scmp.ne.s32.totalorder %s2756_s7, %s1862_s27  ;;  %p1869_p0 = scmp.lt.u32.totalorder %s1862_s27, %s2756_s7 }
  0x5a   : > { %p1865_p12 = pnand %p1863_p11, %p2296_p8 }
  0x5c   : > { %p1866_p13 = pneg %p1865_p12 }
  0x5e   : > { %p1871_p2 = pnand %p1869_p0, %p1866_p13 }
  0x60   : > { %1874 = shalt.err (!%p1871_p2)
}
  0x61   : > { %s1875_s18 = scalar_lea.vmem %s346_s23, 16  ;;  %s1882_s21 = scalar_lea.vmem %s346_s23, 32 }
  0x62   : > { %p1876_p4 = scmp.ne.s32.totalorder %s346_s23, %s1875_s18  ;;  %p1883_p5 = scmp.lt.s32.totalorder %s346_s23, %s346_s23 }
  0x63   : > { %p1884_p10 = scmp.lt.s32.totalorder %s1882_s21, %s1875_s18 }
  0x64   : > { %p1878_p7 = pnand %p1876_p4, %p2296_p8 }
  0x65   : > { %p1885_p1 = por %p1884_p10, %p1883_p5 }
  0x66   : > { %p1879_p9 = pneg %p1878_p7 }
  0x68   : > { %p1886_p3 = pnand %p1885_p1, %p1879_p9 }
  0x6a   : > { %1889 = shalt.err (!%p1886_p3)
}
  0x6b   : > { %1699 = dma.hbm_to_vmem [thread:$0]  (!%p2280_p6), %s2756_s7, 16, %s346_s23, [#allocation17]  }
  0x6c   : > { %s1504_s16 = sadd.s32 4294967294, %s2162_s14   ;;  %s43_s26 = sadd.s32 1, %s2158_s13 }
  0x6d   : > { %s52_s27 = sadd.s32 1, %s2150_s11  ;;  %p45_p1 = scmp.ge.s32.totalorder %s43_s26, 2 }
  0x6e   : > { %p59_p3 = scmp.ne.s32.totalorder %s2150_s11, %s2146_s10  ;;  %p60_p11 = scmp.eq.s32.totalorder %s2162_s14, 0 }
  0x6f   : > { %p65_p12 = scmp.ne.s32.totalorder %s2146_s10, %s2142_s30  ;;  %s2802_s26 = smov (%p45_p1, %s43_s26), 0 }
  0x70   : > { %2757 = sst [smem:[#allocation31_spill]] %s2802_s26  ;;  %p2375_p13 = por %p60_p11, %p59_p3 }
  0x71   : > { %p2759_p0 = scmp.eq.s32.totalorder %s2264_s15, 0  ;;  %s47_s17 = ssub.s32 %s2158_s13, %s2802_s26 }
  0x72   : > { %p269_p4 = scmp.eq.s32.totalorder %s2264_s15, 1  ;;  %p50_p7 = scmp.eq.s32.totalorder %s47_s17, 0 }
  0x73   : > { %p2381_p2 = por %p2759_p0, %p65_p12  ;;  %p275_p9 = scmp.eq.s32.totalorder %s1504_s16, 1 }
  0x74   : > { %p2388_p5 = por %p269_p4, %p59_p3  ;;  %p1723_p10 = scmp.lt.s32.totalorder %s2162_s14, 2 }
  0x75   : > { %s2760_s23 = scalar_select %p2381_p2, 1, 0 }
  0x76   : > { %s2761_s20 = scalar_select %p2388_p5, 1, 0 }
  0x77   : > { %s2394_s22 = scalar_select %p50_p7, %s2150_s11, %s52_s27  }
  0x78   : > { %2762 = sst [smem:[#allocation32_spill]] %s2761_s20  ;;  %p2396_p1 = por %p275_p9, %p65_p12 }
  0x79   : > { %2763 = sst [smem:[#allocation33_spill]] %s2394_s22  ;;  %s2722_s21 = sand.u32 1, %s2150_s11  }
  0x7a   : > { %s2764_s18 = scalar_select %p2396_p1, 1, 0 }
  0x7b   : > { %s2403_s9 = sshll.u32 %s2722_s21, 3  ;;  %s2406_s12 = sshll.u32 %s2158_s13, 7 }
  0x7c   : > { %2765 = sst [smem:[#allocation34_spill]] %s2764_s18  ;;  %p2410_p3 = pnand %p1723_p10, %p2375_p13 }
  0x7d   : > { %s386_s27 = sand.u32 1, %s2162_s14   ;;  %s2767_s1 = sld [smem:[#allocation35_spill]] }
  0x7e   : > { %s2766_s16 = scalar_select %p2410_p3, 1, 0 }
  0x7f   : > { %s390_s21 = scalar_lea.vmem [#allocation7], %s2403_s9  ;;  %s2169_s28 = smov [#allocation12]  }
  0x80   : > { %s397_s3 = sshll.u32 %s390_s21, 4  ;;  %s2424_s5 = sshll.u32 %s2169_s28, 4  ;;  %s2422_s3 = int_to_ptr.vmem [resolvable:$true] %s397_s3  ;;  %s308_s5 = int_to_ptr.vmem [resolvable:$true] %s2424_s5 }
  0x81   : > { %s2426_s7 = scalar_lea.sflag [#allocation8], %s386_s27  ;;  %p2432_p12 = pneg %p2410_p3 }
  0x83   : > { %s2419_s25 = scalar_lea.hbm %s2767_s1, %s2406_s12  ;;  %s1895_s13 = scalar_lea.hbm %s2767_s1, 256 }
  0x84   : > { %s1890_s26 = scalar_lea.hbm %s2419_s25, 128  ;;  %p1896_p4 = scmp.lt.u32.totalorder %s2419_s25, %s2767_s1 }
  0x85   : > { %p1891_p11 = scmp.ne.s32.totalorder %s2419_s25, %s1890_s26  ;;  %p1897_p7 = scmp.lt.u32.totalorder %s1895_s13, %s1890_s26 }
  0x86   : > { %s2768_s24 = scalar_select %p2432_p12, 1, 0 }
  0x87   : > { %p1893_p13 = pnand %p2432_p12, %p1891_p11  ;;  %p1898_p9 = por %p1897_p7, %p1896_p4 }
  0x88   : > { %p1899_p10 = scmp.lt.u32.totalorder %s1890_s26, %s2419_s25 }
  0x89   : > { %p1894_p0 = pneg %p1893_p13 }
  0x8a   : > { %p1900_p1 = por %p1899_p10, %p1898_p9 }
  0x8c   : > { %p1901_p5 = pnand %p1900_p1, %p1894_p0 }
  0x8e   : > { %1904 = shalt.err (!%p1901_p5)
}
  0x8f   : > { %s1905_s27 = scalar_lea.vmem %s2422_s3, 128  ;;  %s2170_s17 = smov [#allocation7]  }
  0x90   : > { %p1906_p11 = scmp.ne.s32.totalorder %s2422_s3, %s1905_s27  ;;  %s1910_s21 = sshll.u32 %s2170_s17, 4  ;;  %s1911_s21 = int_to_ptr.vmem [resolvable:$false] %s1910_s21 }
  0x91   : > { %s1912_s22 = scalar_lea.vmem %s1911_s21, 256  ;;  %p1913_p6 = scmp.lt.s32.totalorder %s2422_s3, %s1911_s21 }
  0x92   : > { %p1908_p13 = pnand %p1906_p11, %p2432_p12  ;;  %p1914_p8 = scmp.lt.s32.totalorder %s1912_s22, %s1905_s27 }
  0x94   : > { %p1909_p2 = pneg %p1908_p13  ;;  %p1915_p4 = por %p1914_p8, %p1913_p6 }
  0x96   : > { %p1916_p7 = pnand %p1915_p4, %p1909_p2 }
  0x98   : > { %1919 = shalt.err (!%p1916_p7)
}
  0x99   : > { %1709 = dma.hbm_to_vmem [thread:$0]  (!%p2410_p3), %s2419_s25, 128, %s2422_s3, %s2426_s7  }
  0x9a   : > { %s1920_s28 = scalar_lea.hbm %s2710_s4, 512  ;;  %p2769_p6 = scmp.ne.s32.totalorder %s2754_s29, 0 }
  0x9b   : > { %p1921_p5 = scmp.ne.s32.totalorder %s2710_s4, %s1920_s28  ;;  %p1927_p1 = scmp.lt.u32.totalorder %s1920_s28, %s2710_s4 }
  0x9d   : > { %p1923_p8 = pnand %p1921_p5, %p2769_p6 }
  0x9f   : > { %p1924_p2 = pneg %p1923_p8 }
  0xa1   : > { %p1929_p0 = pnand %p1927_p1, %p1924_p2 }
  0xa3   : > { %1932 = shalt.err (!%p1929_p0)
}
  0xa4   : > { %s1933_s22 = scalar_lea.vmem %s308_s5, 512  ;;  %p1941_p13 = scmp.lt.s32.totalorder %s308_s5, %s308_s5 }
  0xa5   : > { %p1934_p9 = scmp.ne.s32.totalorder %s308_s5, %s1933_s22  ;;  %p1942_p4 = scmp.lt.s32.totalorder %s1933_s22, %s1933_s22 }
  0xa7   : > { %p1936_p10 = pnand %p1934_p9, %p2769_p6  ;;  %p1943_p7 = por %p1942_p4, %p1941_p13 }
  0xa9   : > { %p1937_p11 = pneg %p1936_p10 }
  0xab   : > { %p1944_p3 = pnand %p1943_p7, %p1937_p11 }
  0xad   : > { %1947 = shalt.err (!%p1944_p3)
}
  0xae   : > { %p2770_p5 = scmp.ne.s32.totalorder %s2752_s19, 0  ;;  %s2771_s1 = smov 8  }
  0xaf   : > { %s2772_s3 = smov 128   ;;  %s2171_s26 = smov [#allocation15]  }
  0xb0   : > { %1690 = dma.hbm_to_vmem [thread:$0]  (!%p2770_p5), %s2710_s4, 512, %s308_s5, [#allocation11], %s2772_s3, %s2772_s3, %s2771_s1  }
  0xb1   : > { %s334_s28 = sshll.u32 %s2171_s26, 4  ;;  %s2172_s17 = smov [#allocation18]   ;;  %s335_s28 = int_to_ptr.vmem [resolvable:$true] %s334_s28 }
  0xb2   : > { %s356_s27 = sshll.u32 %s2172_s17, 4  ;;  %s1948_s14 = scalar_lea.hbm %s2712_s6, 16  ;;  %s357_s27 = int_to_ptr.vmem [resolvable:$true] %s356_s27 }
  0xb3   : > { %p1949_p3 = scmp.ne.s32.totalorder %s2712_s6, %s1948_s14  ;;  %p1955_p1 = scmp.lt.u32.totalorder %s1948_s14, %s2712_s6 }
  0xb5   : > { %p1951_p8 = pnand %p1949_p3, %p2769_p6 }
  0xb7   : > { %p1952_p2 = pneg %p1951_p8 }
  0xb9   : > { %p1957_p0 = pnand %p1955_p1, %p1952_p2 }
  0xbb   : > { %1960 = shalt.err (!%p1957_p0)
}
  0xbc   : > { %s1961_s5 = scalar_lea.vmem %s335_s28, 16  ;;  %s1968_s1 = scalar_lea.vmem %s335_s28, 32 }
  0xbd   : > { %p1962_p9 = scmp.ne.s32.totalorder %s335_s28, %s1961_s5  ;;  %p1969_p13 = scmp.lt.s32.totalorder %s335_s28, %s335_s28 }
  0xbe   : > { %p1970_p4 = scmp.lt.s32.totalorder %s1968_s1, %s1961_s5 }
  0xbf   : > { %p1964_p10 = pnand %p1962_p9, %p2769_p6 }
  0xc0   : > { %p1971_p7 = por %p1970_p4, %p1969_p13 }
  0xc1   : > { %p1965_p11 = pneg %p1964_p10 }
  0xc3   : > { %p1972_p12 = pnand %p1971_p7, %p1965_p11 }
  0xc5   : > { %1975 = shalt.err (!%p1972_p12)
}
  0xc6   : > { %1696 = dma.hbm_to_vmem [thread:$0]  (!%p2770_p5), %s2712_s6, 16, %s335_s28, [#allocation14]  }
  0xc7   : > { %s1976_s3 = scalar_lea.hbm %s2714_s8, 16 }
  0xc8   : > { %p1977_p3 = scmp.ne.s32.totalorder %s2714_s8, %s1976_s3  ;;  %p1983_p12 = scmp.lt.u32.totalorder %s1976_s3, %s2714_s8 }
  0xca   : > { %p1979_p8 = pnand %p1977_p3, %p2769_p6 }
  0xcc   : > { %p1980_p2 = pneg %p1979_p8 }
  0xce   : > { %p1985_p1 = pnand %p1983_p12, %p1980_p2 }
  0xd0   : > { %1988 = shalt.err (!%p1985_p1)
}
  0xd1   : > { %s1989_s22 = scalar_lea.vmem %s357_s27, 16  ;;  %s1996_s28 = scalar_lea.vmem %s357_s27, 32 }
  0xd2   : > { %p1990_p0 = scmp.ne.s32.totalorder %s357_s27, %s1989_s22  ;;  %p1997_p11 = scmp.lt.s32.totalorder %s357_s27, %s357_s27 }
  0xd3   : > { %p1998_p13 = scmp.lt.s32.totalorder %s1996_s28, %s1989_s22 }
  0xd4   : > { %p1992_p9 = pnand %p1990_p0, %p2769_p6 }
  0xd5   : > { %p1999_p4 = por %p1998_p13, %p1997_p11 }
  0xd6   : > { %p1993_p10 = pneg %p1992_p9 }
  0xd8   : > { %p2000_p7 = pnand %p1999_p4, %p1993_p10 }
  0xda   : > { %2003 = shalt.err (!%p2000_p7)
}
  0xdb   : > { %1702 = dma.hbm_to_vmem [thread:$0]  (!%p2770_p5), %s2714_s8, 16, %s357_s27, [#allocation17]  }
  0xdc   : > { %s2518_s30 = scalar_lea.hbm %s2706_s0, %s2406_s12  ;;  %s371_s18 = scalar_lea.vmem [#allocation4], %s2403_s9 }
  0xdd   : > { %s379_s19 = sshll.u32 %s371_s18, 4  ;;  %s2527_s3 = scalar_lea.hbm %s2708_s2, %s2406_s12  ;;  %s2521_s19 = int_to_ptr.vmem [resolvable:$true] %s379_s19 }
  0xde   : > { %s2773_s13 = sand.u32 1, %s2150_s11   ;;  %s2004_s26 = scalar_lea.hbm %s2518_s30, 128 }
  0xdf   : > { %s368_s27 = scalar_lea.sflag [#allocation5], %s2773_s13  ;;  %p2005_p6 = scmp.ne.s32.totalorder %s2518_s30, %s2004_s26 }
  0xe0   : > { %p2774_p5 = scmp.ne.s32.totalorder %s2768_s24, 0  ;;  %s2009_s22 = scalar_lea.hbm %s2706_s0, 256 }
  0xe1   : > { %p2010_p2 = scmp.lt.u32.totalorder %s2518_s30, %s2706_s0  ;;  %p2011_p12 = scmp.lt.u32.totalorder %s2009_s22, %s2004_s26 }
  0xe2   : > { %p2007_p3 = pnand %p2005_p6, %p2774_p5  ;;  %p2013_p0 = scmp.lt.u32.totalorder %s2004_s26, %s2518_s30 }
  0xe3   : > { %p2012_p1 = por %p2011_p12, %p2010_p2 }
  0xe4   : > { %p2008_p8 = pneg %p2007_p3 }
  0xe5   : > { %p2014_p9 = por %p2013_p0, %p2012_p1 }
  0xe7   : > { %p2015_p10 = pnand %p2014_p9, %p2008_p8 }
  0xe9   : > { %2018 = shalt.err (!%p2015_p10)
}
  0xea   : > { %s2019_s12 = scalar_lea.vmem %s2521_s19, 128  ;;  %s2173_s5 = smov [#allocation4]  }
  0xeb   : > { %p2020_p11 = scmp.ne.s32.totalorder %s2521_s19, %s2019_s12  ;;  %s2024_s29 = sshll.u32 %s2173_s5, 4  ;;  %s2025_s29 = int_to_ptr.vmem [resolvable:$false] %s2024_s29 }
  0xec   : > { %s2026_s1 = scalar_lea.vmem %s2025_s29, 256  ;;  %p2027_p7 = scmp.lt.s32.totalorder %s2521_s19, %s2025_s29 }
  0xed   : > { %p2022_p13 = pnand %p2020_p11, %p2774_p5  ;;  %p2028_p6 = scmp.lt.s32.totalorder %s2026_s1, %s2019_s12 }
  0xef   : > { %p2023_p4 = pneg %p2022_p13  ;;  %p2029_p3 = por %p2028_p6, %p2027_p7 }
  0xf1   : > { %p2030_p2 = pnand %p2029_p3, %p2023_p4 }
  0xf3   : > { %2033 = shalt.err (!%p2030_p2)
}
  0xf4   : > { %p2775_p8 = scmp.ne.s32.totalorder %s2766_s16, 0  ;;  %s408_s18 = scalar_lea.vmem [#allocation9], %s2403_s9 }
  0xf5   : > { %s415_s14 = sshll.u32 %s408_s18, 4  ;;  %s2034_s20 = scalar_lea.hbm %s2527_s3, 128  ;;  %s416_s14 = int_to_ptr.vmem [resolvable:$true] %s415_s14 }
  0xf6   : > { %1706 = dma.hbm_to_vmem [thread:$0]  (!%p2775_p8), %s2518_s30, 128, %s2521_s19, %s368_s27  }
  0xf7   : > { %p2035_p12 = scmp.ne.s32.totalorder %s2527_s3, %s2034_s20  ;;  %s2039_s17 = scalar_lea.hbm %s2708_s2, 256 }
  0xf8   : > { %p2040_p9 = scmp.lt.u32.totalorder %s2527_s3, %s2708_s2  ;;  %p2041_p10 = scmp.lt.u32.totalorder %s2039_s17, %s2034_s20 }
  0xf9   : > { %p2037_p1 = pnand %p2035_p12, %p2774_p5  ;;  %p2043_p13 = scmp.lt.u32.totalorder %s2034_s20, %s2527_s3 }
  0xfa   : > { %p2042_p11 = por %p2041_p10, %p2040_p9 }
  0xfb   : > { %p2038_p0 = pneg %p2037_p1 }
  0xfc   : > { %p2044_p4 = por %p2043_p13, %p2042_p11 }
  0xfe   : > { %p2045_p7 = pnand %p2044_p4, %p2038_p0 }
 0x100   : > { %2048 = shalt.err (!%p2045_p7)
}
 0x101   : > { %s2049_s9 = scalar_lea.vmem %s416_s14, 128  ;;  %s2174_s30 = smov [#allocation9]  }
 0x102   : > { %p2050_p6 = scmp.ne.s32.totalorder %s416_s14, %s2049_s9  ;;  %s2054_s19 = sshll.u32 %s2174_s30, 4  ;;  %s2055_s19 = int_to_ptr.vmem [resolvable:$false] %s2054_s19 }
 0x103   : > { %s2056_s27 = scalar_lea.vmem %s2055_s19, 256  ;;  %p2057_p12 = scmp.lt.s32.totalorder %s416_s14, %s2055_s19 }
 0x104   : > { %p2052_p3 = pnand %p2050_p6, %p2774_p5  ;;  %p2058_p1 = scmp.lt.s32.totalorder %s2056_s27, %s2049_s9 }
 0x106   : > { %p2053_p2 = pneg %p2052_p3  ;;  %p2059_p8 = por %p2058_p1, %p2057_p12 }
 0x108   : > { %p2060_p9 = pnand %p2059_p8, %p2053_p2 }
 0x10a   : > { %2063 = shalt.err (!%p2060_p9)
}
 0x10b   : > { %p2776_p10 = scmp.ne.s32.totalorder %s2766_s16, 0  ;;  %s2777_s28 = sld [smem:[#allocation30_spill]] }
 0x10d   : > { %1712 = dma.hbm_to_vmem [thread:$0]  (!%p2776_p10), %s2527_s3, 128, %s416_s14, %s2426_s7  }
 0x111   : > { %p2778_p0 = scmp.ne.s32.totalorder %s2777_s28, 0 }
 0x112   : > { %s2574_s24 = sand.u32 (!%p2778_p0), 1, %s2146_s10   ;;  %p2779_p5 = scmp.ne.s32.totalorder (!%p2778_p0), %s2760_s23, 0 }
 0x113   : > { %424 = sbr.rel (%p2778_p0) target bundleno = 1516 (0x5ec), region = 56  ;;  %s2577_s25 = sshll.u32 (!%p2778_p0), %s2574_s24, 3 }
 0x114   : > { %s427_s12 = scalar_lea.sflag (!%p2778_p0), [#allocation5], %s2574_s24  ;;  %s430_s5 = scalar_lea.vmem (!%p2778_p0), [#allocation4], %s2577_s25 }
 0x11a   : > { %2117 = dma.done.wait (%p2779_p5), %s427_s12, 128  }
 0x11b   : > { %2119 = vsyncadd (%p2779_p5), %s427_s12, 4294967168  ;;  %s435_s7 = sand.u32 1, %s2264_s15   ;;  %s439_s3 = scalar_lea.vmem [#allocation7], %s2577_s25 }
 0x11c   : > { %s436_s16 = scalar_lea.sflag [#allocation8], %s435_s7 }
 0x11d   : > { %2121 = dma.done.wait (%p2779_p5), %s436_s16, 256  }
 0x11e   : > { %2123 = vsyncadd (%p2779_p5), %s436_s16, 4294967040  ;;  %s448_s29 = scalar_lea.vmem [#allocation9], %s2577_s25  ;;  %p2780_p8 = scmp.eq.s32.totalorder %s2264_s15, 0 }
 0x120   : > { %2125 = dma.done.wait (%p2780_p8), [#allocation11], 1024   ;;  %p2781_p11 = pmov %p2780_p8 }
 0x121   : > { %p2782_p13 = pmov %p2780_p8 }
 0x122   : > { %2127 = vsyncadd (%p2781_p11), [#allocation11], 4294966272 }
 0x123   : > { %2129 = dma.done.wait (%p2782_p13), [#allocation14], 528   ;;  %p2783_p4 = pmov %p2780_p8 }
 0x125   : > { %2131 = vsyncadd (%p2783_p4), [#allocation14], 4294966768  ;;  %p2784_p7 = pmov %p2783_p4 }
 0x126   : > { %p2785_p6 = pmov %p2783_p4 }
 0x127   : > { %2133 = dma.done.wait (%p2784_p7), [#allocation17], 32  }
 0x128   : > { %2135 = vsyncadd (%p2785_p6), [#allocation17], 4294967264  ;;  %v2175_v0 = vmov 0.0|0.0   ;;  %vm2176_vm0 = vmmov 0   ;;  %v2177_v1 = vmov 0.0   ;;  %v522_v2 = vld [vmem:[#allocation12] sm:$0xff] }
 0x129   : > { %1628 = vmatprep.subr.bf16.mxu0 %v2175_v0  ;;  %1579 = vmatprep.mubr.msk.f32.mxu0 %vm2176_vm0, %v2177_v1  ;;  %v523_v3 = vld [vmem:[#allocation12 + $0x8] sm:$0xff]  ;;  %v524_v4 = vld [vmem:[#allocation12 + $0x10] sm:$0xff]  ;;  %v525_v6 = vld [vmem:[#allocation12 + $0x18] sm:$0xff]  ;;  %vm533_vm1 = vcmask 261120   ;;  %s2178_s15 = smov 112   ;;  %vm858_vm2 = vcmask 130048  }
 0x12a   : > { %1634 = vmatprep.subr.bf16.mxu1 %v2175_v0  ;;  %1590 = vmatprep.mubr.msk.f32.mxu1 %vm2176_vm0, %v2177_v1  ;;  %v1629_v5 = vpack.c.bf16 %v523_v3, %v522_v2  ;;  %v1632_v7 = vpack.c.bf16 %v525_v6, %v524_v4  ;;  %v695_v8 = vld [vmem:[#allocation10] sm:$0xff]  ;;  %v696_v9 = vld [vmem:[#allocation10 + $0x8] sm:$0xff]  ;;  %v697_v12 = vld [vmem:[#allocation10 + $0x10] sm:$0xff]  ;;  %vm1003_vm3 = vcmask 64512   ;;  %s2786_s23 = sld [smem:[#allocation27_spill]]  ;;  %s2787_s1 = sld [smem:[#allocation32_spill]] }
 0x12b   : > { %v521_v10 = vld [vmem:[%s439_s3] sm:$0xff]  ;;  %v1641_v11 = vpack.c.bf16 %v696_v9, %v695_v8  ;;  %v698_v13 = vld [vmem:[#allocation10 + $0x18] sm:$0xff]  ;;  %v611_v24 = vld [vmem:[#allocation13 + $0x10] sm:$0xff]  ;;  %s2181_s18 = smov 16   ;;  %s516_s20 = scalar_lea.vmem [#allocation19], %s2577_s25 }
 0x12c   : > { %1630 = vmatpush3.bf16.msra.mxu0 %v1629_v5  ;;  %v1644_v14 = vpack.c.bf16 %v698_v13, %v697_v12  ;;  %v694_v15 = vld [vmem:[%s430_s5] sm:$0xff]  ;;  %v1530_v16 = vld [vmem:[#allocation16] ss:$0 sm:$0xff]  ;;  %v610_v18 = vld [vmem:[#allocation13 + $0x8] sm:$0xff]  ;;  %s1323_s13 = sshll.u32 %s516_s20, 4  ;;  %s2788_s21 = sld [smem:[#allocation39_spill]]  ;;  %s2657_s13 = int_to_ptr.vmem [resolvable:$true] %s1323_s13 }
 0x12d   : > { %1631 = vmatprep.subr.bf16.mxu0 %v2175_v0  ;;  %v609_v17 = vld [vmem:[#allocation13] sm:$0xff]  ;;  %v612_v25 = vld [vmem:[#allocation13 + $0x18] sm:$0xff]  ;;  %s1309_s9 = scalar_lea.sflag [#allocation6], %s2574_s24  ;;  %s2064_s30 = scalar_lea.vmem %s2657_s13, 128 }
 0x12e   : > { %v1635_v19 = vpack.c.bf16 %v610_v18, %v609_v17  ;;  %v1638_v26 = vpack.c.bf16 %v612_v25, %v611_v24  ;;  %v1534_v28 = vld [vmem:[#allocation15] ss:$0 sm:$0xff]  ;;  %v608_v29 = vld [vmem:[%s448_s29] sm:$0xff]  ;;  %v1532_v37 = vld [vmem:[#allocation18] ss:$0 sm:$0xff]  ;;  %p2065_p3 = scmp.ne.s32.totalorder %s2657_s13, %s2064_s30  ;;  %s2182_s19 = smov [#allocation19]  }
 0x12f   : > { %v2179_v17 = vmov 1983009808   ;;  %s2068_s27 = sshll.u32 %s2182_s19, 4  ;;  %s2069_s27 = int_to_ptr.vmem [resolvable:$false] %s2068_s27 }
 0x130   : > { %1633 = vmatpush3.bf16.msra.mxu0 %v1632_v7  ;;  %1636 = vmatpush3.bf16.msra.mxu1 %v1635_v19  ;;  %v1188_v18 = vunpack.c.l.s4 %v2179_v17  ;;  %v1190_v19 = vlaneseq  ;;  %s1543_s14 = sshll.u32 %s2786_s23, 7  ;;  %p2789_p2 = scmp.ne.s32.totalorder %s2787_s1, 0 }
 0x131   : > { %1640 = vmatprep.subr.bf16.mxu0 %v2175_v0  ;;  %1637 = vmatprep.subr.bf16.mxu1 %v2175_v0  ;;  %s2070_s28 = scalar_lea.vmem %s2069_s27, 256  ;;  %p2071_p9 = scmp.lt.s32.totalorder %s2657_s13, %s2069_s27 }
 0x132   : > { %s2655_s22 = scalar_lea.hbm %s2788_s21, %s1543_s14  ;;  %p2066_p12 = pnand %p2065_p3, %p2789_p2 }
 0x133   : > { %1580 = vmatmul.mubr.msk.f32.vlgmr.msra.gmra.mrb[0].mxu0 %vm533_vm1, %v521_v10  ;;  %p2072_p10 = scmp.lt.s32.totalorder %s2070_s28, %s2064_s30 }
 0x134   : > { %1642 = vmatpush3.bf16.msra.mxu0 %v1641_v11  ;;  %1601 = vmatprep.mubr.msk.f32.mxu0 %vm2176_vm0, %v2177_v1  ;;  %p2067_p1 = pneg %p2066_p12 }
 0x135   : > { %1643 = vmatprep.subr.bf16.mxu0 %v2175_v0  ;;  %1639 = vmatpush3.bf16.msra.mxu1 %v1638_v26  ;;  %p2073_p0 = por %p2072_p10, %p2071_p9 }
 0x136   : > { %1646 = vmatprep.subr.bf16.mxu1 %v2175_v0 }
 0x137   : > { %p2074_p5 = pnand %p2073_p0, %p2067_p1 }
 0x138   : > { %1645 = vmatpush3.bf16.msra.mxu0 %v1644_v14  ;;  %1591 = vmatmul.mubr.msk.f32.vlgmr.msra.gmra.mrb[0].mxu1 %vm533_vm1, %v608_v29 }
 0x139   : > { %1618 = vmatprep.subr.mxu0 %v2177_v1  ;;  %1608 = vmatprep.mubr.msk.f32.mxu1 %vm2176_vm0, %v2177_v1 }
 0x13b   : > { %1602 = vmatmul.mubr.msk.f32.vlgmr.msra.gmra.mrb[2].mxu0 %vm533_vm1, %v694_v15 }
 0x13c   : > { %1620 = vmatprep.mubr.msk.f32.mxu0 %vm2176_vm0, %v2177_v1 }
 0x206   : > { %v603_v20 = vpop.f32.mrb[0].mxu0 }
 0x207   : > { %v604_v21 = vadd.f32 %v1530_v16, %v603_v20  ;;  %v1581_v22 = vpop.f32.mrb[1].mxu0  ;;  %v1189_v20 = vunpack.c.0.s8 %v1188_v18 }
 0x208   : > { %v2180_v22 = vmov 1934713408  }
 0x209   : > { %607 = vst.msk [vmem:[#allocation2] sm:$0xff] %vm533_vm1, %v604_v21  ;;  %v1191_v21 = vshrl.u32 %v1190_v19, 7 }
 0x20b   : > { %v689_v38 = vpop.f32.mrb[0].mxu1  ;;  %v1192_v25 = vsub.s32 %v1189_v20, %v1191_v21 }
 0x20c   : > { %v690_v39 = vadd.f32 %v1532_v37, %v689_v38  ;;  %v1592_v40 = vpop.f32.mrb[1].mxu1 }
 0x20e   : > { %v776_v27 = vpop.f32.mrb[2].mxu0  ;;  %693 = vst.msk [vmem:[#allocation3] sm:$0xff] %vm533_vm1, %v690_v39 }
 0x20f   : > { %v1603_v30 = vpop.f32.mrb[3].mxu0  ;;  %v777_v31 = vadd.f32 %v1534_v28, %v776_v27 }
 0x210   : > { %v784_v23 = vld [vmem:[#allocation2] sm:$0xff] }
 0x211   : > { %794 = vxpose.xlu1.b32.start.end [1/1] (short) (narrow) %v784_v23, 16  ;;  %786 = vrot.lane.b32.xlu0 %v784_v23, %s2178_s15  ;;  %v780_v32 = vmul.f32 0.25, %v777_v31  ;;  %v1219_v23 = vunpack.c.l.s4 %v2180_v22 }
 0x213   : > { %v1220_v27 = vunpack.c.0.s8 %v1219_v23 }
 0x215   : > { %782 = vrot.lane.b32.xlu0 %v780_v32, %s2178_s15  ;;  %v789_v45 = vld [vmem:[#allocation3] sm:$0xff] }
 0x216   : > { %1619 = vmatpush3.msra.mxu0 %v789_v45 }
 0x283   : > { %v787_v33 = vpop.permute.xlu0 %786 }
 0x284   : > { %826 = vxpose.xlu1.b32.start.end [1/1] (short) (narrow) %v787_v33, 16 }
 0x287   : > { %v783_v44 = vpop.permute.xlu0 %782 }
 0x291   : > { %v810_v34 = vpop.trf.xlu1 }
 0x295   : > { %v811_v35 = vpop.trf.xlu1 }
 0x296   : > { %v1647_v36 = vpack.c.bf16 %v811_v35, %v810_v34  ;;  %v1223_v35 = vsub.s32 %v1220_v27, %v1191_v21 }
 0x298   : > { %1648 = vmatpush3.bf16.msra.mxu1 %v1647_v36 }
 0x299   : > { %1649 = vmatprep.subr.bf16.mxu1 %v2175_v0 }
 0x29b   : > { %1609 = vmatmul.mubr.msk.f32.vlgmr.msra.gmra.mrb[2].mxu1 %vm858_vm2, %v780_v32 }
 0x29c   : > { %1615 = vmatprep.mubr.msk.f32.mxu1 %vm2176_vm0, %v2177_v1 }
 0x304   : > { %v842_v41 = vpop.trf.xlu1 }
 0x308   : > { %v843_v42 = vpop.trf.xlu1 }
 0x309   : > { %v1650_v43 = vpack.c.bf16 %v843_v42, %v842_v41 }
 0x30b   : > { %1651 = vmatpush3.bf16.msra.mxu1 %v1650_v43 }
 0x30c   : > { %1623 = vmatprep.subr.mxu1 %v2177_v1 }
 0x30e   : > { %1616 = vmatmul.mubr.msk.f32.vlgmr.msra.gmra.mrb[4].mxu1 %vm858_vm2, %v783_v44 }
 0x30f   : > { %1625 = vmatprep.mubr.msk.f32.mxu1 %vm2176_vm0, %v2177_v1 }
 0x36e   : > { %v927_v46 = vpop.f32.mrb[2].mxu1 }
 0x36f   : > { %v1610_v47 = vpop.f32.mrb[3].mxu1  ;;  %v1004_v48 = vsel %vm1003_vm3, %v927_v46, -inf }
 0x370   : > { %1005 = vmax.xlane.f32.xlu0 %v1004_v48 }
 0x386   : > { %791 = vrot.lane.b32.xlu0 %v789_v45, %s2178_s15 }
 0x3e1   : > { %v999_v49 = vpop.f32.mrb[4].mxu1 }
 0x3e2   : > { %v1617_v50 = vpop.f32.mrb[5].mxu1  ;;  %v1007_v51 = vsel %vm1003_vm3, %v999_v49, -inf }
 0x3e3   : > { %1008 = vmax.xlane.f32.xlu1 %v1007_v51 }
 0x3fd   : > { %v1006_v52 = vpop.xlane.xlu0 %1005 }
 0x3fe   : > { %v1016_v53 = vsub.f32 %v927_v46, %v1006_v52  ;;  %v1010_v63 = vsub.f32 -inf, %v1006_v52 }
 0x400   : > { %v1018_v54 = vmul.f32 1.442695, %v1016_v53  ;;  %v1012_v0 = vmul.f32 1.442695, %v1010_v63 }
 0x401   : > { %v792_v55 = vpop.permute.xlu0 %791 }
 0x402   : > { %1624 = vmatpush3.msra.mxu1 %v792_v55  ;;  %1794 = vpow2.f32 %v1018_v54 }
 0x40c   : > { %v1795_v56 = vpop.eup %1794 }
 0x40d   : > { %1621 = vmatmul.mubr.msk.f32.vlgmr.msra.gmra.mrb[4].mxu0 %vm1003_vm3, %v1795_v56  ;;  %v1024_v57 = vsel %vm1003_vm3, %v1795_v56, 0.0 }
 0x40e   : > { %1025 = vadd.xlane.f32.xlu1 %v1024_v57 }
 0x470   : > { %v1009_v58 = vpop.xlane.xlu1 %1008 }
 0x471   : > { %v1017_v59 = vsub.f32 %v999_v49, %v1009_v58  ;;  %v1011_v11 = vsub.f32 -inf, %v1009_v58 }
 0x473   : > { %v1020_v60 = vmul.f32 1.442695, %v1017_v59  ;;  %v1014_v12 = vmul.f32 1.442695, %v1011_v11 }
 0x475   : > { %1796 = vpow2.f32 %v1020_v60 }
 0x476   : > { %1798 = vpow2.f32 %v1012_v0 }
 0x47f   : > { %v1797_v61 = vpop.eup %1796 }
 0x480   : > { %1626 = vmatmul.mubr.msk.f32.vlgmr.msra.gmra.mrb[6].mxu1 %vm1003_vm3, %v1797_v61  ;;  %v1027_v62 = vsel %vm1003_vm3, %v1797_v61, 0.0  ;;  %v1799_v2 = vpop.eup %1798 }
 0x481   : > { %1028 = vadd.xlane.f32.xlu1 %v1027_v62  ;;  %v1022_v4 = vmul.f32 0.0, %v1799_v2 }
 0x49b   : > { %v1026_v3 = vpop.xlane.xlu1 %1025 }
 0x49c   : > { %v1030_v5 = vadd.f32 %v1026_v3, %v1022_v4 }
 0x49e   : > { %1800 = vrcp.f32 %v1030_v5 }
 0x49f   : > { %1802 = vpow2.f32 %v1014_v12 }
 0x4a8   : > { %v1801_v9 = vpop.eup %1800 }
 0x4a9   : > { %v1803_v13 = vpop.eup %1802 }
 0x4aa   : > { %v1023_v15 = vmul.f32 0.0, %v1803_v13 }
 0x4e0   : > { %v1101_v6 = vpop.f32.mrb[4].mxu0 }
 0x4e1   : > { %v1178_v7 = vadd.f32 %v1101_v6, %v1022_v4  ;;  %v1622_v8 = vpop.f32.mrb[5].mxu0 }
 0x4e3   : > { %v1184_v10 = vmul.f32 %v1801_v9, %v1178_v7 }
 0x4e5   : > { %v1186_v30 = vcombine.high %v1184_v10, %v2177_v1  ;;  %v1193_v32 = vrot.slane %v1184_v10, %v1192_v25 }
 0x4e7   : > { %v1200_v36 = vrot.slane %v1186_v30, %v1192_v25 }
 0x50e   : > { %v1029_v14 = vpop.xlane.xlu1 %1028 }
 0x50f   : > { %v1031_v16 = vadd.f32 %v1029_v14, %v1023_v15 }
 0x511   : > { %1804 = vrcp.f32 %v1031_v16 }
 0x51b   : > { %v1805_v29 = vpop.eup %1804 }
 0x553   : > { %v1174_v24 = vpop.f32.mrb[6].mxu1 }
 0x554   : > { %v1179_v26 = vadd.f32 %v1174_v24, %v1023_v15  ;;  %v1627_v28 = vpop.f32.mrb[7].mxu1 }
 0x556   : > { %v1185_v31 = vmul.f32 %v1805_v29, %v1179_v26 }
 0x558   : > { %v1201_v33 = vcombine.high %v1185_v31, %v2177_v1  ;;  %v1208_v34 = vrot.slane %v1185_v31, %v1192_v25 }
 0x55a   : > { %v1215_v37 = vrot.slane %v1201_v33, %v1192_v25  ;;  %v1216_v38 = vcombine.low %v1193_v32, %v1208_v34  ;;  %v1217_v39 = vcombine.high %v1193_v32, %v1208_v34 }
 0x55c   : > { %v1224_v40 = vrot.slane %v1216_v38, %v1223_v35  ;;  %v1231_v41 = vrot.slane %v1217_v39, %v1223_v35  ;;  %v1232_v42 = vcombine.low %v1200_v36, %v1215_v37  ;;  %v1233_v43 = vcombine.high %v1200_v36, %v1215_v37 }
 0x55e   : > { %v1240_v44 = vrot.slane %v1232_v42, %v1223_v35  ;;  %v1247_v45 = vrot.slane %v1233_v43, %v1223_v35  ;;  %v1252_v46 = vcombine.low %v1224_v40, %v1231_v41  ;;  %v1540_v47 = vcombine.high %v1224_v40, %v1231_v41 }
 0x560   : > { %v1259_v48 = vrot.slane %v1252_v46, %v1192_v25  ;;  %v1267_v49 = vrot.slane %v1540_v47, %v1192_v25  ;;  %v1268_v50 = vcombine.low %v1240_v44, %v1247_v45  ;;  %v1541_v1 = vcombine.high %v1240_v44, %v1247_v45 }
 0x562   : > { %v1275_v51 = vrot.slane %v1268_v50, %v1192_v25  ;;  %v1283_v52 = vrot.slane %v1541_v1, %v1192_v25  ;;  %v1284_v53 = vcombine.low %v1259_v48, %v1267_v49 }
 0x564   : > { %v1292_v54 = vcombine.low %v1275_v51, %v1283_v52  ;;  %v1291_v55 = vrot.slane %v1284_v53, %v1223_v35 }
 0x566   : > { %v1299_v56 = vrot.slane %v1292_v54, %v1223_v35 }
 0x568   : > { %v1301_v57 = vcombine.high %v1291_v55, %v1299_v56  ;;  %v1300_v58 = vcombine.low %v1291_v55, %v1299_v56 }
 0x56a   : > { %1303 = vrot.lane.b32.xlu1 %v1301_v57, %s2181_s18 }
 0x5dc   : > { %v1304_v59 = vpop.permute.xlu1 %1303 }
 0x5dd   : > { %v1306_v60 = vsel %vm858_vm2, %v1300_v58, %v1304_v59 }
 0x5de   : > { %1307 = vst.msk [vmem:[%s516_s20] sm:$0xff] %vm533_vm1, %v1306_v60 }
 0x5df   : > { %2077 = shalt.err (!%p2074_p5)
}
 0x5e0   : > { %s2078_s24 = scalar_lea.hbm %s2655_s22, 128  ;;  %s2082_s5 = scalar_lea.hbm %s2788_s21, 256 }
 0x5e1   : > { %p2079_p8 = scmp.ne.s32.totalorder %s2655_s22, %s2078_s24  ;;  %p2083_p4 = scmp.lt.u32.totalorder %s2655_s22, %s2788_s21 }
 0x5e2   : > { %p2084_p7 = scmp.lt.u32.totalorder %s2082_s5, %s2078_s24  ;;  %p2086_p3 = scmp.lt.u32.totalorder %s2078_s24, %s2655_s22 }
 0x5e3   : > { %p2080_p11 = pnand %p2079_p8, %p2789_p2 }
 0x5e4   : > { %p2085_p6 = por %p2084_p7, %p2083_p4 }
 0x5e5   : > { %p2081_p13 = pneg %p2080_p11 }
 0x5e6   : > { %p2087_p12 = por %p2086_p3, %p2085_p6 }
 0x5e8   : > { %p2088_p1 = pnand %p2087_p12, %p2081_p13 }
 0x5ea   : > { %2091 = shalt.err (!%p2088_p1)
}
 0x5eb   : > { %1682 = dma.vmem_to_hbm [thread:$0]  (%p2789_p2), %s2657_s13, 128, %s2655_s22, %s1309_s9  }
 0x5ec PF: > { %s2790_s3 = sld [smem:[#allocation26_spill]]  ;;  %s2791_s29 = sld [smem:[#allocation34_spill]] }
 0x5ed   : > { %s2792_s15 = sld [smem:[#allocation29_spill]] }
 0x5f2   : > { %s1335_s23 = sand.u32 1, %s2790_s3   ;;  %p2793_p9 = scmp.ne.s32.totalorder %s2791_s29, 0 }
 0x5f3   : > { %p2794_p10 = scmp.ge.s32.totalorder %s2792_s15, 2  ;;  %s1336_s18 = scalar_lea.sflag [#allocation6], %s1335_s23 }
 0x5f5   : > { %p1714_p0 = pnand %p2794_p10, %p2793_p9 }
 0x5f7   : > { %2137 = dma.done.wait (!%p1714_p0), %s1336_s18, 128  }
 0x5f8   : > { %2139 = vsyncadd (!%p1714_p0), %s1336_s18, 4294967168  ;;  %s31_s14 = sadd.s32 1, %s2792_s15   ;;  %s2795_s1 = sld [smem:[#allocation33_spill]] }
 0x5f9   : > { %p28_p5 = scmp.ge.s32.totalorder %s31_s14, 4   ;;  %s2796_s12 = sld [smem:[#allocation28_spill]] }
 0x5fa   : > { %s2797_s13 = sld [smem:[#allocation31_spill]]  ;;  %s2798_s30 = smov %s2146_s10 }
 0x5fb   : > { %s2799_s10 = smov %s2150_s11  ;;  %30 = sbr.rel (!%p28_p5) target bundleno = 17 (0x11), region = 153 }
 0x5fe   : > { %s2800_s11 = smov %s2795_s1 }
 0x602   :  { %1341 = vsyncpa [#allocation5], 1 }
 0x603   :  { %1343 = vsyncpa [#allocation5 + $0x1], 1 }
 0x604   :  { %1344 = vsyncpa [#allocation8], 1 }
 0x605   :  { %1346 = vsyncpa [#allocation8 + $0x1], 1 }
 0x606   :  { %1347 = vsyncpa [#allocation11], 1 }
 0x607   :  { %1348 = vsyncpa [#allocation14], 1 }
 0x608   :  { %1349 = vsyncpa [#allocation17], 1 }
 0x609   :  { %1350 = vsyncpa [#allocation6], 1 }
 0x60a   :  { %1352 = vsyncpa [#allocation6 + $0x1], 1 }

</bundles_post_ra>
